<compile_context>
chip_gen: v7x
topology: tpu7x:2x2x1
jax: 0.10.0
libtpu: 0.0.40
codegen_flags: <defaults>
</compile_context>

<pallas_src>
import functools

import jax
import jax.numpy as jnp
from jax.experimental import pallas as pl
from jax.experimental.pallas import tpu as pltpu


def _round_up(x: int, m: int) -> int:
    return (x + m - 1) // m * m


def _matmul_body(x_ref, w_ref, o_ref, acc_ref, *, compute_dtype, wsq_ref=None):
    """Square the raw weight tile and accumulate x @ W^2 over the K grid axis."""
    k = pl.program_id(2)

    @pl.when(k == 0)
    def _init():
        acc_ref[...] = jnp.zeros_like(acc_ref)

    # Square in f32 on the VPU (hides under the MXU slot).
    w_sq = jnp.square(w_ref[...].astype(jnp.float32))

    if wsq_ref is not None:
        # only_pred=False path: emit W^2 straight from the kernel so the
        # wrapper never re-reads `trans` from HBM. The (k, j) block is
        # re-written once per i tile with identical data (redundant but
        # correct, and negligible for the small i-tile counts this sees).
        wsq_ref[...] = w_sq.astype(wsq_ref.dtype)

    xv = x_ref[...]
    if compute_dtype == jnp.bfloat16:
        # bf16 operands hit MXU peak on v5e/v6e; accumulation stays f32.
        lhs = xv.astype(jnp.bfloat16)
        rhs = w_sq.astype(jnp.bfloat16)
    else:
        lhs = xv.astype(jnp.float32)
        rhs = w_sq

    acc_ref[...] += jnp.dot(lhs, rhs, preferred_element_type=jnp.float32)

    @pl.when(k == pl.num_programs(2) - 1)
    def _finalize():
        o_ref[...] = acc_ref[...].astype(o_ref.dtype)


def _kernel_pred_only(x_ref, w_ref, o_ref, acc_ref, *, compute_dtype):
    _matmul_body(x_ref, w_ref, o_ref, acc_ref, compute_dtype=compute_dtype)


def _kernel_with_weights(x_ref, w_ref, o_ref, wsq_ref, acc_ref, *, compute_dtype):
    _matmul_body(x_ref, w_ref, o_ref, acc_ref, compute_dtype=compute_dtype,
                 wsq_ref=wsq_ref)


def lin_translator_forward(
    x,
    trans,
    only_pred: bool = True,
    *,
    tm: int = 256,
    tn: int = 256,
    tk: int = 512,
    use_bf16_matmul: bool = False,
    allow_small_fallback: bool = False,
):
    """Pallas implementation of LinTranslator.forward.

    x:     (n_spots, dim_input)    float32
    trans: (dim_input, dim_output) float32 raw parameter; squared inside kernel.

    Returns out (n_spots, dim_output), and additionally square(trans).T when
    only_pred=False — matching the PyTorch module.
    """
    M, K = x.shape
    K2, N = trans.shape
    assert K == K2, "x / trans contraction dims must match"

    # Sub-vreg problems: per-pallas_call overhead dominates; let XLA fuse it.
    if allow_small_fallback and (M * K + K * N + M * N) * 4 < (1 << 16):
        w_sq = jnp.square(trans)
        out = x @ w_sq
        return out if only_pred else (out, w_sq.T)

    # Clamp tiles to the (padded) problem while keeping TPU layout legality:
    #   tm multiple of 8 (sublane), tn/tk multiples of 128 (lane).
    tm = min(tm, _round_up(M, 8))
    tn = min(tn, _round_up(N, 128))
    tk = min(tk, _round_up(K, 128))

    Mp, Kp, Np = _round_up(M, tm), _round_up(K, tk), _round_up(N, tn)

    xp = x if (Mp == M and Kp == K) else jnp.pad(x, ((0, Mp - M), (0, Kp - K)))
    wp = trans if (Kp == K and Np == N) else jnp.pad(
        trans, ((0, Kp - K), (0, Np - N)))

    grid = (Mp // tm, Np // tn, Kp // tk)

    compute_dtype = jnp.bfloat16 if use_bf16_matmul else jnp.float32

    # VMEM budget: double-buffered inputs + outputs + accumulator, ~25% headroom.
    need = 2 * (tm * tk + tk * tn) * 4          # double-buffered x / trans tiles
    need += 2 * tm * tn * 4                     # double-buffered output tile
    if not only_pred:
        need += 2 * tk * tn * 4                 # double-buffered W^2 output tile
    need += tm * tn * 4                         # f32 accumulator scratch
    vmem_limit = int(min(max(need * 1.25, 32 * 1024 * 1024), 64 * 1024 * 1024))

    in_specs = [
        pl.BlockSpec((tm, tk), lambda i, j, k: (i, k)),
        pl.BlockSpec((tk, tn), lambda i, j, k: (k, j)),
    ]
    out_spec_o = pl.BlockSpec((tm, tn), lambda i, j, k: (i, j))
    scratch = [pltpu.VMEM((tm, tn), jnp.float32)]

    if only_pred:
        kernel = functools.partial(_kernel_pred_only, compute_dtype=compute_dtype)
        out = pl.pallas_call(
            kernel,
            out_shape=jax.ShapeDtypeStruct((Mp, Np), x.dtype),
            grid_spec=pltpu.PrefetchScalarGridSpec(
                num_scalar_prefetch=0,
                grid=grid,
                in_specs=in_specs,
                out_specs=out_spec_o,
                scratch_shapes=scratch,
            ),
            compiler_params=pltpu.CompilerParams(
                # M/N parallel lets v7x shard across its 2 TensorCores;
                # K carries the accumulator so it must stay "arbitrary".
                dimension_semantics=("parallel", "parallel", "arbitrary"),
                vmem_limit_bytes=vmem_limit,
            ),
        )(xp, wp)
        return out[:M, :N]

    kernel = functools.partial(_kernel_with_weights, compute_dtype=compute_dtype)
    out, w_sq = pl.pallas_call(
        kernel,
        out_shape=(
            jax.ShapeDtypeStruct((Mp, Np), x.dtype),
            jax.ShapeDtypeStruct((Kp, Np), trans.dtype),
        ),
        grid_spec=pltpu.PrefetchScalarGridSpec(
            num_scalar_prefetch=0,
            grid=grid,
            in_specs=in_specs,
            out_specs=(
                out_spec_o,
                pl.BlockSpec((tk, tn), lambda i, j, k: (k, j)),
            ),
            scratch_shapes=scratch,
        ),
        compiler_params=pltpu.CompilerParams(
            # The W^2 output block index is independent of i; keep i
            # "arbitrary" so the two v7x cores never race on the same block.
            dimension_semantics=("arbitrary", "parallel", "arbitrary"),
            vmem_limit_bytes=vmem_limit,
        ),
    )(xp, wp)
    # Transpose deferred to the wrapper (tiny, and only when requested) —
    # preserves the PyTorch return signature (out, W^2.T).
    return out[:M, :N], w_sq[:K, :N].T


if __name__ == "__main__":
    key = jax.random.PRNGKey(0)
    k_x, k_w = jax.random.split(key)

    # Small-but-nontrivial shapes: multiple K tiles exercise the accumulator
    # pipeline, and dim_output pads to a lane-dense multiple of 128.
    n_spots, dim_input, dim_output = 32, 384, 192
    x = jax.random.normal(k_x, (n_spots, dim_input), dtype=jnp.float32)
    trans = jax.random.normal(k_w, (dim_input, dim_output), dtype=jnp.float32)

    ref_w = jnp.square(trans)
    ref_out = x @ ref_w

    # f32 path with small tiles -> grid (1, 2, 3): tiling + K accumulation.
    out = lin_translator_forward(x, trans, only_pred=True, tm=32, tn=128, tk=128)
    out = jax.block_until_ready(out)
    assert out.shape == (n_spots, dim_output)
    assert jnp.allclose(out, ref_out, atol=1e-2, rtol=1e-4)

    # only_pred=False path: squared weights come straight from the kernel.
    out2, w_t = lin_translator_forward(
        x, trans, only_pred=False, tm=32, tn=128, tk=128)
    out2, w_t = jax.block_until_ready((out2, w_t))
    assert w_t.shape == (dim_output, dim_input)
    assert jnp.allclose(out2, ref_out, atol=1e-2, rtol=1e-4)
    assert jnp.allclose(w_t, ref_w.T, atol=1e-6, rtol=1e-6)

    # bf16 MXU-operand path (f32 accumulation) — looser tolerance.
    out_bf16 = lin_translator_forward(
        x, trans, only_pred=True, tm=32, tn=128, tk=128, use_bf16_matmul=True)
    out_bf16 = jax.block_until_ready(out_bf16)
    rel_err = jnp.max(jnp.abs(out_bf16 - ref_out)) / (jnp.max(jnp.abs(ref_out)) + 1e-6)
    assert rel_err < 5e-2

    # Default (large) tiles on non-aligned shapes exercises the padding path.
    out_def = jax.block_until_ready(lin_translator_forward(x, trans))
    assert jnp.allclose(out_def, ref_out, atol=1e-2, rtol=1e-4)

    print("KERNEL_OK")
</pallas_src>

<mosaic_0001>
module attributes {stable_mosaic.version = 11 : i64} {
  func.func @_kernel_pred_only(%arg0: i32, %arg1: i32, %arg2: i32, %arg3: memref<32x128xf32, #tpu.memory_space<vmem>>, %arg4: memref<128x128xf32, #tpu.memory_space<vmem>>, %arg5: memref<32x128xf32, #tpu.memory_space<vmem>>, %arg6: memref<32x128xf32, #tpu.memory_space<vmem>>) attributes {dimension_semantics = [#tpu.dimension_semantics<parallel>, #tpu.dimension_semantics<parallel>, #tpu.dimension_semantics<arbitrary>], iteration_bounds = array<i64: 1, 2, 3>, scalar_prefetch = 0 : i64, scratch_operands = 1 : i64, tpu.core_type = #tpu.core_type<tc>, window_params = [{transform_indices = @transform_0, window_bounds = array<i64: 32, 128>}, {transform_indices = @transform_1, window_bounds = array<i64: 128, 128>}, {transform_indices = @transform_2, window_bounds = array<i64: 32, 128>}]} {
    %c0_i32 = arith.constant 0 : i32
    %0 = arith.cmpi eq, %arg2, %c0_i32 : i32
    %1 = arith.extui %0 : i1 to i32
    %c0_i32_0 = arith.constant 0 : i32
    %2 = arith.cmpi ne, %1, %c0_i32_0 : i32
    scf.if %2 {
      %cst_9 = arith.constant 0.000000e+00 : f32
      %13 = vector.broadcast %cst_9 : f32 to vector<32x128xf32>
      %c0_10 = arith.constant 0 : index
      %c0_11 = arith.constant 0 : index
      %14 = vector.load %arg6[%c0_10, %c0_11] : memref<32x128xf32, #tpu.memory_space<vmem>>, vector<32x128xf32>
      tpu.vector_store %arg6[%c0_10, %c0_11], %13 {strides = array<i32>} : memref<32x128xf32, #tpu.memory_space<vmem>>, vector<32x128xf32>,
    } else {
    }
    %c0 = arith.constant 0 : index
    %c0_1 = arith.constant 0 : index
    %3 = vector.load %arg4[%c0, %c0_1] : memref<128x128xf32, #tpu.memory_space<vmem>>, vector<128x128xf32>
    %4 = arith.mulf %3, %3 : vector<128x128xf32>
    %c0_2 = arith.constant 0 : index
    %c0_3 = arith.constant 0 : index
    %5 = vector.load %arg3[%c0_2, %c0_3] : memref<32x128xf32, #tpu.memory_space<vmem>>, vector<32x128xf32>
    %c0_4 = arith.constant 0 : index
    %c0_5 = arith.constant 0 : index
    %6 = vector.load %arg6[%c0_4, %c0_5] : memref<32x128xf32, #tpu.memory_space<vmem>>, vector<32x128xf32>
    %cst = arith.constant dense<0.000000e+00> : vector<32x128xf32>
    %7 = tpu.matmul %5, %4, %cst {dimension_numbers = #tpu.dot_dimension_numbers<[1], [0], [0], [1], [0, 0, 1, 1], [], []>} : vector<32x128xf32>, vector<128x128xf32>, vector<32x128xf32> -> vector<32x128xf32>
    %8 = arith.addf %6, %7 : vector<32x128xf32>
    %c0_6 = arith.constant 0 : index
    %c0_7 = arith.constant 0 : index
    %9 = vector.load %arg6[%c0_6, %c0_7] : memref<32x128xf32, #tpu.memory_space<vmem>>, vector<32x128xf32>
    tpu.vector_store %arg6[%c0_6, %c0_7], %8 {strides = array<i32>} : memref<32x128xf32, #tpu.memory_space<vmem>>, vector<32x128xf32>,
    %c2_i32 = arith.constant 2 : i32
    %10 = arith.cmpi eq, %arg2, %c2_i32 : i32
    %11 = arith.extui %10 : i1 to i32
    %c0_i32_8 = arith.constant 0 : i32
    %12 = arith.cmpi ne, %11, %c0_i32_8 : i32
    scf.if %12 {
      %c0_9 = arith.constant 0 : index
      %c0_10 = arith.constant 0 : index
      %13 = vector.load %arg6[%c0_9, %c0_10] : memref<32x128xf32, #tpu.memory_space<vmem>>, vector<32x128xf32>
      %c0_11 = arith.constant 0 : index
      %c0_12 = arith.constant 0 : index
      %14 = vector.load %arg5[%c0_11, %c0_12] : memref<32x128xf32, #tpu.memory_space<vmem>>, vector<32x128xf32>
      tpu.vector_store %arg5[%c0_11, %c0_12], %13 {strides = array<i32>} : memref<32x128xf32, #tpu.memory_space<vmem>>, vector<32x128xf32>,
    } else {
    }
    return
  }
  func.func @transform_0(%arg0: i32, %arg1: i32, %arg2: i32) -> (i32, i32) {
    %c0_i32 = arith.constant 0 : i32
    return %arg0, %arg2 : i32, i32
  }
  func.func @transform_1(%arg0: i32, %arg1: i32, %arg2: i32) -> (i32, i32) {
    %c0_i32 = arith.constant 0 : i32
    return %arg2, %arg1 : i32, i32
  }
  func.func @transform_2(%arg0: i32, %arg1: i32, %arg2: i32) -> (i32, i32) {
    %c0_i32 = arith.constant 0 : i32
    return %arg0, %arg1 : i32, i32
  }
}

</mosaic_0001>

<bundles_post_ra>
// kernel: tpu_custom_call.1
= control target key start
LH: loop header
LB: loop body
LE: loop exit
PB: predicated region body
PF: predicated region fallthrough
CT: control target
= control target key end

     0   :  { %s1418_s0 = inlined_call_operand.hbm [shape: f32[32,384], index: 0, kind: input, shape index: {}]   ;;  %s1419_s1 = inlined_call_operand.hbm [shape: f32[384,256], index: 1, kind: input, shape index: {}]   ;;  %s1420_s2 = inlined_call_operand.hbm [shape: f32[32,256], index: 2, kind: output, shape index: {}]  }
   0x1   :  { %1433 = sst [smem:[#allocation16_spill]] %s1418_s0 }
   0x2   :  { %1434 = sst [smem:[#allocation17_spill]] %s1420_s2 }
   0x3   :  { %7 = vsyncpa [#allocation4], 0 }
   0x4   :  { %9 = vsyncpa [#allocation4 + $0x1], 0 }
   0x5   :  { %10 = vsyncpa [#allocation7], 0 }
   0x6   :  { %12 = vsyncpa [#allocation7 + $0x1], 0 }
   0x7   :  { %13 = vsyncpa [#allocation5], 0 }
   0x8   :  { %15 = vsyncpa [#allocation5 + $0x1], 0  ;;  %s1023_s9 = smov 0   ;;  %s1025_s10 = smov 0  }
   0x9   :  { %s1027_s11 = smov 0   ;;  %s1029_s12 = smov 0  }
   0xa   :  { %s1031_s13 = smov 0   ;;  %s1033_s14 = smov 0  }
   0xb   :  { %s1035_s15 = smov 0   ;;  %s1037_s16 = smov 0  }
   0xc   :  { %s1039_s17 = smov 0   ;;  %s1041_s18 = smov 0  }
   0xd   :  { %s1043_s19 = smov 0   ;;  %s1045_s20 = smov 0  }
   0xe   :  { %s1047_s21 = smov 0   ;;  %s1049_s22 = smov 0  }
   0xf LB: > { %1435 = sst [smem:[#allocation12_spill]] %s975_s17  ;;  %s519_s23 = sadd.s32 4294967295, %s995_s22   ;;  %s995_s22 = sphi %s1049_s22, %s21_s22   ;;  %s991_s21 = sphi %s1047_s21, %s1481_s21   ;;  %s987_s20 = sphi %s1045_s20, %s1480_s20   ;;  %s983_s19 = sphi %s1043_s19, %s1479_s19   ;;  %s979_s18 = sphi %s1041_s18, %s1478_s18   ;;  %s975_s17 = sphi %s1039_s17, %s1477_s17   ;;  %s971_s16 = sphi %s1037_s16, %s1476_s16   ;;  %s967_s15 = sphi %s1035_s15, %s1475_s15   ;;  %s963_s14 = sphi %s1033_s14, %s1474_s14   ;;  %s959_s13 = sphi %s1031_s13, %s1473_s13   ;;  %s955_s12 = sphi %s1029_s12, %s1472_s12   ;;  %s951_s11 = sphi %s1027_s11, %s1471_s11   ;;  %s947_s10 = sphi %s1025_s10, %s1470_s10   ;;  %s943_s9 = sphi %s1023_s9, %s1469_s9  }
  0x10   : > { %s33_s24 = sadd.s32 1, %s987_s20  ;;  %s49_s26 = sadd.s32 1, %s975_s17 }
  0x11   : > { %p1093_p0 = scmp.ge.s32.totalorder %s33_s24, 3  ;;  %p56_p1 = scmp.ne.s32.totalorder %s975_s17, %s971_s16 }
  0x12   : > { %p1424_p2 = scmp.eq.s32.totalorder %s995_s22, 0  ;;  %p62_p4 = scmp.ne.s32.totalorder %s971_s16, %s967_s15 }
  0x13   : > { %s1483_s24 = smov (%p1093_p0, %s33_s24), 0  ;;  %p1116_p5 = scmp.eq.s32.totalorder %s519_s23, 0 }
  0x14   : > { %1437 = sst [smem:[#allocation13_spill]] %s1483_s24  ;;  %p1107_p3 = por %p1424_p2, %p56_p1 }
  0x15   : > { %s1114_s28 = ssub.s32 %s987_s20, %s1483_s24  ;;  %p1121_p7 = scmp.eq.s32.totalorder %s519_s23, 5 }
  0x16   : > { %s1439_s29 = scalar_select %p1116_p5, 1, 0 }
  0x17   : > { %p47_p6 = scmp.eq.s32.totalorder %s1114_s28, 0  ;;  %p1127_p8 = por %p1116_p5, %p62_p4 }
  0x18   : > { %s1440_s30 = scalar_select %p1121_p7, 1, 0 }
  0x19   : > { %s1441_s3 = scalar_select %p1127_p8, 1, 0 }
  0x1a   : > { %s1132_s4 = scalar_select %p47_p6, %s975_s17, %s49_s26  }
  0x1b   : > { %p1423_p9 = scmp.lt.s32.totalorder %s995_s22, 6  ;;  %s142_s5 = sand.u32 1, %s975_s17  }
  0x1c   : > { %1442 = sst [smem:[#allocation14_spill]] %s1132_s4  ;;  %s523_s6 = sshll.u32 %s142_s5, 5 }
  0x1d   : > { %s524_s7 = sshll.u32 %s987_s20, 7  ;;  %s1443_s0 = sld [smem:[#allocation16_spill]] }
  0x1e   : > { %s146_s23 = scalar_lea.vmem [#allocation3], %s523_s6  ;;  %p1148_p10 = pnand %p1423_p9, %p1107_p3 }
  0x1f   : > { %s155_s2 = sshll.u32 %s146_s23, 4  ;;  %s1152_s4 = scalar_lea.sflag [#allocation4], %s142_s5  ;;  %s1142_s2 = int_to_ptr.vmem [resolvable:$true] %s155_s2 }
  0x20   : > { %p787_p12 = pneg %p1148_p10 }
  0x23   : > { %s1140_s24 = scalar_lea.hbm %s1443_s0, %s524_s7  ;;  %s790_s27 = scalar_lea.hbm %s1443_s0, 1536 }
  0x24   : > { %s785_s7 = scalar_lea.hbm %s1140_s24, 512  ;;  %p791_p3 = scmp.lt.u32.totalorder %s1140_s24, %s1443_s0 }
  0x25   : > { %p786_p11 = scmp.ne.s32.totalorder %s1140_s24, %s785_s7  ;;  %p792_p4 = scmp.lt.u32.totalorder %s790_s27, %s785_s7 }
  0x26   : > { %p794_p9 = scmp.lt.u32.totalorder %s785_s7, %s1140_s24 }
  0x27   : > { %p788_p13 = pnand %p787_p12, %p786_p11  ;;  %p793_p6 = por %p792_p4, %p791_p3 }
  0x29   : > { %p789_p1 = pneg %p788_p13  ;;  %p795_p2 = por %p794_p9, %p793_p6 }
  0x2b   : > { %p796_p8 = pnand %p795_p2, %p789_p1 }
  0x2d   : > { %799 = shalt.err (!%p796_p8)
}
  0x2e   : > { %s800_s5 = scalar_lea.vmem %s1142_s2, 512  ;;  %s997_s6 = smov [#allocation3]  }
  0x2f   : > { %p801_p11 = scmp.ne.s32.totalorder %s1142_s2, %s800_s5  ;;  %s805_s8 = sshll.u32 %s997_s6, 4  ;;  %s806_s8 = int_to_ptr.vmem [resolvable:$false] %s805_s8 }
  0x30   : > { %s807_s15 = scalar_lea.vmem %s806_s8, 1024  ;;  %p808_p5 = scmp.lt.s32.totalorder %s1142_s2, %s806_s8 }
  0x31   : > { %p803_p13 = pnand %p801_p11, %p787_p12  ;;  %p809_p3 = scmp.lt.s32.totalorder %s807_s15, %s800_s5 }
  0x33   : > { %p804_p7 = pneg %p803_p13  ;;  %p810_p4 = por %p809_p3, %p808_p5 }
  0x35   : > { %p811_p9 = pnand %p810_p4, %p804_p7 }
  0x37   : > { %814 = shalt.err (!%p811_p9)
}
  0x38   : > { %s998_s7 = smov 384   ;;  %s1427_s27 = smov 128  }
  0x39   : > { %s1428_s23 = smov 8   ;;  %p529_p2 = scmp.ge.s32.totalorder %s995_s22, 1 }
  0x3a   : > { %655 = dma.hbm_to_vmem [thread:$0]  (!%p1148_p10), %s1140_s24, 512, %s1142_s2, %s1152_s4, %s998_s7, %s1427_s27, %s1428_s23  }
  0x3b   : > { %p186_p5 = scmp.lt.s32.totalorder %s995_s22, 7  ;;  %s520_s6 = sadd.s32 4294967294, %s995_s22  }
  0x3c   : > { %s36_s8 = sadd.s32 1, %s991_s21  ;;  %s77_s15 = sadd.s32 1, %s963_s14 }
  0x3d   : > { %p1184_p7 = pnand %p529_p2, %p186_p5  ;;  %s1485_s8 = smov (!%p1093_p0, %s36_s8), %s991_s21 }
  0x3e   : > { %p84_p8 = scmp.ne.s32.totalorder %s963_s14, %s959_s13  ;;  %p90_p10 = scmp.ne.s32.totalorder %s959_s13, %s955_s12 }
  0x3f   : > { %p38_p12 = scmp.ge.s32.totalorder %s1485_s8, 2  ;;  %s105_s2 = sadd.s32 1, %s951_s11 }
  0x40   : > { %p1446_p1 = scmp.eq.s32.totalorder %s995_s22, 0  ;;  %p1448_p11 = scmp.ne.s32.totalorder %s1439_s29, 0 }
  0x41   : > { %s1487_s8 = smov (%p38_p12, %s1485_s8), 0  ;;  %p115_p0 = scmp.ne.s32.totalorder %s951_s11, %s947_s10 }
  0x42   : > { %p1201_p6 = por %p84_p8, %p1446_p1  ;;  %p1207_p13 = por %p90_p10, %p1448_p11 }
  0x43   : > { %1450 = sst [smem:[#allocation15_spill]] %s1487_s8  ;;  %p121_p3 = scmp.ne.s32.totalorder %s947_s10, %s943_s9 }
  0x44   : > { %s1449_s4 = scalar_select %p1207_p13, 1, 0 }
  0x45   : > { %s73_s12 = ssub.s32 %s991_s21, %s1487_s8  ;;  %p122_p4 = scmp.eq.s32.totalorder %s520_s6, 5 }
  0x46   : > { %s74_s25 = sor.u32 %s73_s12, %s1114_s28  ;;  %p103_p9 = scmp.eq.s32.totalorder %s73_s12, 0 }
  0x47   : > { %p75_p2 = scmp.eq.s32.totalorder %s74_s25, 0  ;;  %p1451_p5 = scmp.ne.s32.totalorder %s1440_s30, 0 }
  0x48   : > { %s1227_s26 = scalar_select %p103_p9, %s951_s11, %s105_s2  }
  0x49   : > { %p1222_p8 = por %p1451_p5, %p115_p0  ;;  %p1232_p10 = por %p122_p4, %p121_p3 }
  0x4a   : > { %s1230_s7 = scalar_select %p75_p2, %s963_s14, %s77_s15  }
  0x4b   : > { %s1452_s29 = scalar_select %p1222_p8, 1, 0 }
  0x4c   : > { %s1453_s27 = scalar_select %p1232_p10, 1, 0 }
  0x4d   : > { %s165_s23 = sand.u32 1, %s963_s14   ;;  %s539_s28 = sshll.u32 %s987_s20, 5 }
  0x4e   : > { %s525_s6 = sshll.u32 %s165_s23, 7  ;;  %s175_s0 = sadd.s32 %s991_s21, %s539_s28 }
  0x4f   : > { %s169_s8 = scalar_lea.vmem [#allocation6], %s525_s6  ;;  %s528_s25 = sshll.u32 %s175_s0, 7 }
  0x50   : > { %s178_s12 = sshll.u32 %s169_s8, 4  ;;  %s1244_s2 = scalar_lea.hbm %s1419_s1, %s528_s25  ;;  %s1239_s12 = int_to_ptr.vmem [resolvable:$true] %s178_s12 }
  0x51   : > { %p1454_p12 = scmp.lt.s32.totalorder %s995_s22, 6  ;;  %s1254_s0 = scalar_lea.sflag [#allocation7], %s165_s23 }
  0x52   : > { %s815_s8 = scalar_lea.hbm %s1244_s2, 2048  ;;  %s820_s6 = scalar_lea.hbm %s1419_s1, 12288 }
  0x53   : > { %p1250_p1 = pnand %p1454_p12, %p1201_p6  ;;  %p816_p11 = scmp.ne.s32.totalorder %s1244_s2, %s815_s8 }
  0x54   : > { %p821_p6 = scmp.lt.u32.totalorder %s1244_s2, %s1419_s1  ;;  %p822_p9 = scmp.lt.u32.totalorder %s820_s6, %s815_s8 }
  0x55   : > { %p817_p0 = pneg %p1250_p1  ;;  %p824_p5 = scmp.lt.u32.totalorder %s815_s8, %s1244_s2 }
  0x56   : > { %p823_p2 = por %p822_p9, %p821_p6 }
  0x57   : > { %p818_p3 = pnand %p817_p0, %p816_p11 }
  0x58   : > { %p825_p12 = por %p824_p5, %p823_p2 }
  0x59   : > { %p819_p4 = pneg %p818_p3 }
  0x5b   : > { %p826_p10 = pnand %p825_p12, %p819_p4 }
  0x5d   : > { %829 = shalt.err (!%p826_p10)
}
  0x5e   : > { %s830_s23 = scalar_lea.vmem %s1239_s12, 2048  ;;  %s1001_s30 = smov [#allocation6]  }
  0x5f   : > { %p831_p11 = scmp.ne.s32.totalorder %s1239_s12, %s830_s23  ;;  %s835_s17 = sshll.u32 %s1001_s30, 4  ;;  %s836_s17 = int_to_ptr.vmem [resolvable:$false] %s835_s17 }
  0x60   : > { %s837_s24 = scalar_lea.vmem %s836_s17, 4096  ;;  %p838_p13 = scmp.lt.s32.totalorder %s1239_s12, %s836_s17 }
  0x61   : > { %p833_p3 = pnand %p831_p11, %p817_p0  ;;  %p839_p6 = scmp.lt.s32.totalorder %s837_s24, %s830_s23 }
  0x63   : > { %p834_p8 = pneg %p833_p3  ;;  %p840_p9 = por %p839_p6, %p838_p13 }
  0x65   : > { %p841_p2 = pnand %p840_p9, %p834_p8 }
  0x67   : > { %844 = shalt.err (!%p841_p2)
}
  0x68   : > { %s1002_s8 = smov 256   ;;  %s1456_s6 = smov 8  }
  0x69   : > { %s1457_s28 = smov 128   ;;  %190 = sbr.rel (%p1184_p7) target bundleno = 415 (0x19f), region = 28 }
  0x6a   : > { %658 = dma.hbm_to_vmem [thread:$0]  (!%p1250_p1), %s1244_s2, 2048, %s1239_s12, %s1254_s0, %s1002_s8, %s1457_s28, %s1456_s6  }
  0x6b   : > { %s192_s25 = sand.u32 (!%p1184_p7), 1, %s971_s16   ;;  %p1458_p13 = scmp.ne.s32.totalorder (!%p1184_p7), %s1441_s3, 0 }
  0x6c   : > { %s530_s30 = sshll.u32 (!%p1184_p7), %s192_s25, 5  ;;  %s193_s23 = scalar_lea.sflag (!%p1184_p7), [#allocation4], %s192_s25 }
  0x6d   : > { %s1287_s17 = scalar_lea.vmem (!%p1184_p7), [#allocation3], %s530_s30 }
  0x70   : > { %930 = dma.done.wait (%p1458_p13), %s193_s23, 512  }
  0x71   : > { %932 = vsyncadd (%p1458_p13), %s193_s23, 4294966784  ;;  %s201_s15 = sand.u32 1, %s959_s13   ;;  %p1459_p7 = scmp.ne.s32.totalorder %s1449_s4, 0 }
  0x72   : > { %s531_s24 = sshll.u32 %s201_s15, 7  ;;  %s202_s12 = scalar_lea.sflag [#allocation7], %s201_s15 }
  0x73   : > { %s1294_s2 = scalar_lea.vmem [#allocation6], %s531_s24 }
  0x74   : > { %934 = dma.done.wait (%p1459_p7), %s202_s12, 2048  }
  0x75   : > { %936 = vsyncadd (%p1459_p7), %s202_s12, 4294965248  ;;  %s228_s5 = sand.u32 1, %s947_s10   ;;  %p533_p8 = scmp.ne.s32.totalorder %s979_s18, 0 }
  0x76   : > { %s532_s0 = sshll.u32 %s228_s5, 5  ;;  %v1003_v0 = vmov (!%p533_p8), 0.0  }
  0x77   : > { %s1303_s8 = scalar_lea.vmem [#allocation8], %s532_s0  ;;  %237 = sbr.rel (%p533_p8) target bundleno = 126 (0x7e), region = 40  ;;  %238 = vst [vmem:[#allocation2] sm:$0xff] (!%p533_p8), %v1003_v0  ;;  %239 = vst [vmem:[#allocation2 + $0x8] sm:$0xff] (!%p533_p8), %v1003_v0 }
  0x78   : > { %240 = vst [vmem:[#allocation2 + $0x10] sm:$0xff] (!%p533_p8), %v1003_v0  ;;  %241 = vst [vmem:[#allocation2 + $0x18] sm:$0xff] (!%p533_p8), %v1003_v0 }
  0x7e PF: > { %v242_v1 = vld [vmem:[%s1294_s2] sm:$0xff]  ;;  %v243_v2 = vld [vmem:[%s1294_s2 + $0x8] sm:$0xff]  ;;  %v244_v3 = vld [vmem:[%s1294_s2 + $0x10] sm:$0xff]  ;;  %p534_p10 = scmp.ne.s32.totalorder %s979_s18, 2 }
  0x7f   : > { %v258_v4 = vmul.f32 %v242_v1, %v242_v1  ;;  %v259_v5 = vmul.f32 %v243_v2, %v243_v2  ;;  %v245_v6 = vld [vmem:[%s1294_s2 + $0x18] sm:$0xff]  ;;  %v260_v7 = vmul.f32 %v244_v3, %v244_v3  ;;  %v246_v8 = vld [vmem:[%s1294_s2 + $0x20] sm:$0xff]  ;;  %v247_v9 = vld [vmem:[%s1294_s2 + $0x28] sm:$0xff] }
  0x80   : > { %v261_v10 = vmul.f32 %v245_v6, %v245_v6  ;;  %v262_v12 = vmul.f32 %v246_v8, %v246_v8  ;;  %v263_v13 = vmul.f32 %v247_v9, %v247_v9  ;;  %v248_v15 = vld [vmem:[%s1294_s2 + $0x30] sm:$0xff]  ;;  %v249_v16 = vld [vmem:[%s1294_s2 + $0x38] sm:$0xff]  ;;  %v274_v17 = vld [vmem:[%s1287_s17] sm:$0xff] }
  0x81   : > { %v598_v11 = vpack.c.bf16 %v259_v5, %v258_v4  ;;  %v276_v18 = vld [vmem:[%s1287_s17 + $0x10] sm:$0xff]  ;;  %v264_v20 = vmul.f32 %v248_v15, %v248_v15  ;;  %v265_v21 = vmul.f32 %v249_v16, %v249_v16  ;;  %v250_v22 = vld [vmem:[%s1294_s2 + $0x40] sm:$0xff]  ;;  %v251_v23 = vld [vmem:[%s1294_s2 + $0x48] sm:$0xff]  ;;  %592 = vmatprep.mubr.f32.mxu0 %v274_v17 }
  0x82   : > { %v602_v14 = vpack.c.bf16 %v261_v10, %v260_v7  ;;  %v606_v19 = vpack.c.bf16 %v263_v13, %v262_v12  ;;  %595 = vmatprep.mubr.f32.mxu1 %v276_v18  ;;  %v266_v25 = vmul.f32 %v250_v22, %v250_v22  ;;  %v267_v26 = vmul.f32 %v251_v23, %v251_v23  ;;  %v252_v27 = vld [vmem:[%s1294_s2 + $0x50] sm:$0xff]  ;;  %v253_v28 = vld [vmem:[%s1294_s2 + $0x58] sm:$0xff]  ;;  %v254_v32 = vld [vmem:[%s1294_s2 + $0x60] sm:$0xff] }
  0x83   : > { %599 = vmatprep.subr.bf16.mxu0 %v598_v11  ;;  %630 = vmatprep.subr.bf16.mxu1 %v598_v11  ;;  %v610_v24 = vpack.c.bf16 %v265_v21, %v264_v20  ;;  %v268_v30 = vmul.f32 %v252_v27, %v252_v27  ;;  %v269_v31 = vmul.f32 %v253_v28, %v253_v28  ;;  %v255_v33 = vld [vmem:[%s1294_s2 + $0x68] sm:$0xff]  ;;  %v256_v37 = vld [vmem:[%s1294_s2 + $0x70] sm:$0xff]  ;;  %v257_v38 = vld [vmem:[%s1294_s2 + $0x78] sm:$0xff] }
  0x84   : > { %601 = vmatpush3.bf16.msra.mxu0 %v598_v11  ;;  %638 = vmatpush3.bf16.msra.mxu1 %v598_v11  ;;  %v614_v29 = vpack.c.bf16 %v267_v26, %v266_v25  ;;  %v270_v35 = vmul.f32 %v254_v32, %v254_v32  ;;  %v271_v36 = vmul.f32 %v255_v33, %v255_v33  ;;  %v275_v43 = vld [vmem:[%s1287_s17 + $0x8] sm:$0xff]  ;;  %v277_v44 = vld [vmem:[%s1287_s17 + $0x18] sm:$0xff]  ;;  %v278_v47 = vld [vmem:[#allocation2] sm:$0xff] }
  0x85   : > { %603 = vmatprep.subr.bf16.mxu0 %v602_v14  ;;  %631 = vmatprep.subr.bf16.mxu1 %v602_v14  ;;  %v618_v34 = vpack.c.bf16 %v269_v31, %v268_v30  ;;  %v272_v40 = vmul.f32 %v256_v37, %v256_v37  ;;  %v273_v41 = vmul.f32 %v257_v38, %v257_v38  ;;  %v279_v45 = vld [vmem:[#allocation2 + $0x8] sm:$0xff]  ;;  %v281_v46 = vld [vmem:[#allocation2 + $0x18] sm:$0xff]  ;;  %v280_v48 = vld [vmem:[#allocation2 + $0x10] sm:$0xff] }
  0x86   : > { %v622_v39 = vpack.c.bf16 %v271_v36, %v270_v35 }
  0x87   : > { %v626_v42 = vpack.c.bf16 %v273_v41, %v272_v40 }
  0x88   : > { %605 = vmatpush3.bf16.msra.mxu0 %v602_v14  ;;  %639 = vmatpush3.bf16.msra.mxu1 %v602_v14 }
  0x89   : > { %607 = vmatprep.subr.bf16.mxu0 %v606_v19  ;;  %632 = vmatprep.subr.bf16.mxu1 %v606_v19 }
  0x8c   : > { %609 = vmatpush3.bf16.msra.mxu0 %v606_v19  ;;  %640 = vmatpush3.bf16.msra.mxu1 %v606_v19 }
  0x8d   : > { %611 = vmatprep.subr.bf16.mxu0 %v610_v24  ;;  %633 = vmatprep.subr.bf16.mxu1 %v610_v24 }
  0x90   : > { %613 = vmatpush3.bf16.msra.mxu0 %v610_v24  ;;  %641 = vmatpush3.bf16.msra.mxu1 %v610_v24 }
  0x91   : > { %615 = vmatprep.subr.bf16.mxu0 %v614_v29  ;;  %634 = vmatprep.subr.bf16.mxu1 %v614_v29 }
  0x94   : > { %617 = vmatpush3.bf16.msra.mxu0 %v614_v29  ;;  %642 = vmatpush3.bf16.msra.mxu1 %v614_v29 }
  0x95   : > { %619 = vmatprep.subr.bf16.mxu0 %v618_v34  ;;  %635 = vmatprep.subr.bf16.mxu1 %v618_v34 }
  0x98   : > { %621 = vmatpush3.bf16.msra.mxu0 %v618_v34  ;;  %643 = vmatpush3.bf16.msra.mxu1 %v618_v34 }
  0x99   : > { %623 = vmatprep.subr.bf16.mxu0 %v622_v39  ;;  %636 = vmatprep.subr.bf16.mxu1 %v622_v39 }
  0x9c   : > { %625 = vmatpush3.bf16.msra.mxu0 %v622_v39  ;;  %644 = vmatpush3.bf16.msra.mxu1 %v622_v39 }
  0x9d   : > { %627 = vmatprep.subr.bf16.mxu0 %v626_v42  ;;  %637 = vmatprep.subr.bf16.mxu1 %v626_v42 }
  0xa0   : > { %629 = vmatpush3.bf16.msra.mxu0 %v626_v42  ;;  %645 = vmatpush3.bf16.msra.mxu1 %v626_v42 }
  0xa3   : > { %593 = vmatmul.mubr.f32.vlgmr.msra.gmra.mrb[0].mxu0 %v275_v43  ;;  %596 = vmatmul.mubr.f32.vlgmr.msra.gmra.mrb[0].mxu1 %v277_v44 }
 0x174   : > { %378 = sbr.rel (%p534_p10) target bundleno = 387 (0x183), region = 44 }
 0x176   : > { %v594_v49 = vpop.f32.mrb[0].mxu0  ;;  %v597_v50 = vpop.f32.mrb[0].mxu1 }
 0x177   : > { %v368_v51 = vadd.f32 %v594_v49, %v279_v45  ;;  %v370_v52 = vadd.f32 %v597_v50, %v281_v46  ;;  %v348_v53 = vpop.f32.mrb[1].mxu0  ;;  %v358_v54 = vpop.f32.mrb[1].mxu1 }
 0x178   : > { %v367_v55 = vadd.f32 %v348_v53, %v278_v47  ;;  %v369_v56 = vadd.f32 %v358_v54, %v280_v48 }
 0x179   : > { %372 = vst [vmem:[#allocation2 + $0x8] sm:$0xff] %v368_v51  ;;  %374 = vst [vmem:[#allocation2 + $0x18] sm:$0xff] %v370_v52 }
 0x17a   : > { %371 = vst [vmem:[#allocation2] sm:$0xff] %v367_v55  ;;  %373 = vst [vmem:[#allocation2 + $0x10] sm:$0xff] %v369_v56 }
 0x180   : > { %v380_v58 = vld [vmem:[#allocation2 + $0x8] sm:$0xff]  ;;  %v382_v60 = vld [vmem:[#allocation2 + $0x18] sm:$0xff] }
 0x181   : > { %v379_v57 = vld [vmem:[#allocation2] sm:$0xff]  ;;  %v381_v59 = vld [vmem:[#allocation2 + $0x10] sm:$0xff]  ;;  %384 = vst [vmem:[%s1303_s8 + $0x8] sm:$0xff] %v380_v58  ;;  %386 = vst [vmem:[%s1303_s8 + $0x18] sm:$0xff] %v382_v60 }
 0x182   : > { %383 = vst [vmem:[%s1303_s8] sm:$0xff] %v379_v57  ;;  %385 = vst [vmem:[%s1303_s8 + $0x10] sm:$0xff] %v381_v59 }
 0x183 PF: > { %s536_s3 = sshll.u32 %s983_s19, 7  ;;  %s1460_s6 = sld [smem:[#allocation17_spill]] }
 0x184   : > { %s403_s25 = sshll.u32 %s1303_s8, 4  ;;  %s1342_s30 = scalar_lea.sflag [#allocation5], %s228_s5  ;;  %s1338_s25 = int_to_ptr.vmem [resolvable:$true] %s403_s25 }
 0x185   : > { %s845_s23 = scalar_lea.vmem %s1338_s25, 512  ;;  %p1461_p0 = scmp.ne.s32.totalorder %s1452_s29, 0 }
 0x186   : > { %p846_p1 = scmp.ne.s32.totalorder %s1338_s25, %s845_s23  ;;  %s1004_s19 = smov [#allocation8]  }
 0x187   : > { %s849_s17 = sshll.u32 %s1004_s19, 4  ;;  %s850_s17 = int_to_ptr.vmem [resolvable:$false] %s849_s17 }
 0x188   : > { %p847_p4 = pnand %p846_p1, %p1461_p0  ;;  %s851_s15 = scalar_lea.vmem %s850_s17, 1024 }
 0x189   : > { %s1335_s28 = scalar_lea.hbm %s1460_s6, %s536_s3  ;;  %p852_p12 = scmp.lt.s32.totalorder %s1338_s25, %s850_s17 }
 0x18a   : > { %p848_p5 = pneg %p847_p4  ;;  %p853_p11 = scmp.lt.s32.totalorder %s851_s15, %s845_s23 }
 0x18c   : > { %p854_p3 = por %p853_p11, %p852_p12 }
 0x18e   : > { %p855_p6 = pnand %p854_p3, %p848_p5 }
 0x190   : > { %858 = shalt.err (!%p855_p6)
}
 0x191   : > { %s859_s24 = scalar_lea.hbm %s1335_s28, 512  ;;  %s863_s5 = scalar_lea.hbm %s1460_s6, 1024 }
 0x192   : > { %p860_p9 = scmp.ne.s32.totalorder %s1335_s28, %s859_s24  ;;  %p864_p7 = scmp.lt.u32.totalorder %s1335_s28, %s1460_s6 }
 0x193   : > { %p865_p8 = scmp.lt.u32.totalorder %s863_s5, %s859_s24  ;;  %p867_p1 = scmp.lt.u32.totalorder %s859_s24, %s1335_s28 }
 0x194   : > { %p861_p2 = pnand %p860_p9, %p1461_p0 }
 0x195   : > { %p866_p10 = por %p865_p8, %p864_p7 }
 0x196   : > { %p862_p13 = pneg %p861_p2 }
 0x197   : > { %p868_p4 = por %p867_p1, %p866_p10 }
 0x199   : > { %p869_p5 = pnand %p868_p4, %p862_p13 }
 0x19b   : > { %872 = shalt.err (!%p869_p5)
}
 0x19c   : > { %s1005_s3 = smov 128   ;;  %s1006_s18 = smov 256  }
 0x19d   : > { %s1007_s4 = smov 8  }
 0x19e   : > { %650 = dma.vmem_to_hbm [thread:$0]  (%p1461_p0), %s1338_s25, 512, %s1335_s28, %s1342_s30, %s1005_s3, %s1006_s18, %s1007_s4  }
 0x19f PF: > { %p664_p12 = scmp.ge.s32.totalorder %s995_s22, 2  ;;  %s418_s23 = sand.u32 1, %s943_s9  }
 0x1a0   : > { %p1462_p11 = scmp.ne.s32.totalorder %s1453_s27, 0  ;;  %s419_s19 = scalar_lea.sflag [#allocation5], %s418_s23 }
 0x1a2   : > { %p660_p3 = pnand %p664_p12, %p1462_p11 }
 0x1a4   : > { %938 = dma.done.wait (!%p660_p3), %s419_s19, 512  }
 0x1a5   : > { %940 = vsyncadd (!%p660_p3), %s419_s19, 4294966784  ;;  %s21_s22 = sadd.s32 1, %s995_s22   ;;  %s1464_s29 = sld [smem:[#allocation12_spill]] }
 0x1a6   : > { %p1371_p6 = scmp.ge.s32.totalorder %s21_s22, 8   ;;  %s1465_s28 = sld [smem:[#allocation14_spill]] }
 0x1a7   : > { %s1466_s27 = sld [smem:[#allocation13_spill]]  ;;  %s1467_s25 = sld [smem:[#allocation15_spill]] }
 0x1a8   : > { %s1469_s9 = smov %s947_s10  ;;  %s1470_s10 = smov %s951_s11 }
 0x1a9   : > { %s1471_s11 = smov %s1227_s26  ;;  %s1472_s12 = smov %s959_s13 }
 0x1aa   : > { %s1473_s13 = smov %s963_s14  ;;  %s1474_s14 = smov %s1230_s7 }
 0x1ab   : > { %s1475_s15 = smov %s971_s16  ;;  %s1476_s16 = smov %s1464_s29 }
 0x1ac   : > { %s1477_s17 = smov %s1465_s28  ;;  %s1478_s18 = smov %s987_s20 }
 0x1ad   : > { %s1479_s19 = smov %s991_s21  ;;  %s1480_s20 = smov %s1466_s27 }
 0x1ae   : > { %s1481_s21 = smov %s1467_s25  ;;  %20 = sbr.rel (!%p1371_p6) target bundleno = 15 (0xf), region = 94 }
 0x1b5   :  { %424 = vsyncpa [#allocation4], 1 }
 0x1b6   :  { %426 = vsyncpa [#allocation4 + $0x1], 1 }
 0x1b7   :  { %427 = vsyncpa [#allocation7], 1 }
 0x1b8   :  { %429 = vsyncpa [#allocation7 + $0x1], 1 }
 0x1b9   :  { %430 = vsyncpa [#allocation5], 1 }
 0x1ba   :  { %432 = vsyncpa [#allocation5 + $0x1], 1 }

</bundles_post_ra>
